<compile_context>
chip_gen: v5e
topology: v5e:2x2
jax: 0.10.0
libtpu: 0.0.40
codegen_flags: <defaults>
</compile_context>

<pallas_src>
import jax
import jax.numpy as jnp
from jax import lax
from jax.experimental import pallas as pl
from jax.experimental.pallas import tpu as pltpu

HIDDEN_PAD = 128   # hidden 64 lane-padded to 128 (in-kernel only, lane-dense h)
OUT_PAD = 8        # 3 classes sublane-padded to 8


def mlp_kernel(x_ref, w1_ref, b1_ref, w2t_ref, b2t_ref, ot_ref):
    # dense: (bt, d_in) @ (d_in, 128) + (1, 128)   (hidden lane-padded 64 -> 128)
    h = jnp.dot(x_ref[...], w1_ref[...], preferred_element_type=jnp.float32)
    h = jnp.maximum(h + b1_ref[...], 0.0)          # ReLU; padded lanes stay 0
    # out_proj, transposed: contract the hidden dim of w2^T (8, 128) with
    # h (bt, 128) -> (8, bt): classes on sublanes, batch on lanes.
    out_t = lax.dot_general(
        w2t_ref[...], h,
        dimension_numbers=(((1,), (1,)), ((), ())),
        preferred_element_type=jnp.float32,
    )
    ot_ref[...] = (out_t + b2t_ref[...]).astype(ot_ref.dtype)


def prepare_params(w1, b1, w2, b2):
    """Pad / transpose the small weight tensors ONCE; reuse across calls.

    w1: (d_in, 64), b1: (1, 64) or (64,), w2: (64, 3), b2: (1, 3) or (3,).
    """
    d_in, hidden = w1.shape
    n_out = w2.shape[1]
    w1p = jnp.zeros((d_in, HIDDEN_PAD), w1.dtype).at[:, :hidden].set(w1)
    b1p = jnp.zeros((1, HIDDEN_PAD), w1.dtype).at[:, :hidden].set(
        jnp.asarray(b1).reshape(1, -1))
    w2t = jnp.zeros((OUT_PAD, HIDDEN_PAD), w2.dtype).at[:n_out, :hidden].set(w2.T)
    b2t = jnp.zeros((OUT_PAD, 1), w2.dtype).at[:n_out, 0].set(
        jnp.asarray(b2).reshape(-1))
    return w1p, b1p, w2t, b2t


def _pick_block_rows(B, d_in):
    """Row tile: single step for small B, else a multiple of 128."""
    if B <= 128:
        return B                       # block == full batch dim (legal block shape)
    # target ~2 MiB of x per tile (double-buffered -> ~4 MiB), multiple of 128
    bt = ((2 << 20) // (4 * d_in)) // 128 * 128
    bt = max(128, min(bt, 4096))
    # guarantee >= 2 grid steps so the "parallel" axis shards across v7x's 2 TCs
    half = (((B + 1) // 2) + 127) // 128 * 128
    return min(bt, half)


def mlp_multiclass_forward(x, padded_params, *, n_out=3):
    """x: (B, d_in) f32; padded_params from prepare_params(). Returns (B, n_out)."""
    w1p, b1p, w2t, b2t = padded_params
    B, d_in = x.shape
    h_pad = w1p.shape[1]
    o_pad = w2t.shape[0]

    bt = _pick_block_rows(B, d_in)
    grid = (pl.cdiv(B, bt),)           # ragged last block handled by Pallas

    flops = 2 * B * (d_in * h_pad + h_pad * o_pad)
    bytes_accessed = (B * d_in + o_pad * B
                      + w1p.size + b1p.size + w2t.size + b2t.size) * 4

    vmem = pltpu.MemorySpace.VMEM
    out_t = pl.pallas_call(
        mlp_kernel,
        out_shape=jax.ShapeDtypeStruct((o_pad, B), x.dtype),
        grid=grid,
        in_specs=[
            # x: one batch tile per grid step (double-buffered by the pipeline)
            pl.BlockSpec((bt, d_in), lambda i: (i, 0), memory_space=vmem),
            # weights/biases: constant block index -> fetched once, VMEM-resident
            pl.BlockSpec((d_in, h_pad), lambda i: (0, 0), memory_space=vmem),
            pl.BlockSpec((1, h_pad), lambda i: (0, 0), memory_space=vmem),
            pl.BlockSpec((o_pad, h_pad), lambda i: (0, 0), memory_space=vmem),
            pl.BlockSpec((o_pad, 1), lambda i: (0, 0), memory_space=vmem),
        ],
        # transposed output: classes on sublanes, batch on lanes (lane-dense vst)
        out_specs=pl.BlockSpec((o_pad, bt), lambda i: (0, i), memory_space=vmem),
        compiler_params=pltpu.CompilerParams(
            dimension_semantics=("parallel",),
            vmem_limit_bytes=48 << 20,
        ),
        cost_estimate=pl.CostEstimate(
            flops=flops, transcendentals=0, bytes_accessed=bytes_accessed),
    )(x, w1p, b1p, w2t, b2t)

    # strip the zero-padded class sublanes and transpose back to (B, n_out)
    return out_t[:n_out, :].T


def init_params(key, input_size, hidden=64, n_classes=3):
    """Deterministic init mimicking nn.Linear's U(-1/sqrt(fan_in), 1/sqrt(fan_in))."""
    k1, k2, k3, k4 = jax.random.split(key, 4)
    bound1 = 1.0 / jnp.sqrt(input_size)
    bound2 = 1.0 / jnp.sqrt(hidden)
    # stored transposed vs. PyTorch: (in_features, out_features)
    w1 = jax.random.uniform(k1, (input_size, hidden), jnp.float32, -bound1, bound1)
    b1 = jax.random.uniform(k2, (1, hidden), jnp.float32, -bound1, bound1)
    w2 = jax.random.uniform(k3, (hidden, n_classes), jnp.float32, -bound2, bound2)
    b2 = jax.random.uniform(k4, (1, n_classes), jnp.float32, -bound2, bound2)
    return w1, b1, w2, b2


if __name__ == "__main__":
    key = jax.random.PRNGKey(0)
    kx, kp, kx2 = jax.random.split(key, 3)

    input_size = 32
    w1, b1, w2, b2 = init_params(kp, input_size)
    padded = prepare_params(w1, b1, w2, b2)       # padded once, reused per call

    def ref_fn(x):  # pure-JAX reference (dropout is identity in eval mode)
        return jnp.maximum(x @ w1 + b1, 0.0) @ w2 + b2

    # small batch: single-tile path
    x_small = jax.random.normal(kx, (8, input_size), dtype=jnp.float32)
    out_small = jax.block_until_ready(mlp_multiclass_forward(x_small, padded))
    assert out_small.shape == (8, 3)
    assert jnp.allclose(out_small, ref_fn(x_small), atol=1e-5, rtol=1e-5)

    # larger ragged batch: multi-step tiled path (grid = cdiv(300, 256) = 2)
    x_big = jax.random.normal(kx2, (300, input_size), dtype=jnp.float32)
    out_big = jax.block_until_ready(mlp_multiclass_forward(x_big, padded))
    assert out_big.shape == (300, 3)
    assert jnp.allclose(out_big, ref_fn(x_big), atol=1e-5, rtol=1e-5)

    print("KERNEL_OK")
</pallas_src>

<mosaic_0001>
module attributes {stable_mosaic.version = 11 : i64} {
  func.func @mlp_kernel(%arg0: i32, %arg1: memref<8x32xf32, #tpu.memory_space<vmem>>, %arg2: memref<32x128xf32, #tpu.memory_space<vmem>>, %arg3: memref<1x128xf32, #tpu.memory_space<vmem>>, %arg4: memref<8x128xf32, #tpu.memory_space<vmem>>, %arg5: memref<8x1xf32, #tpu.memory_space<vmem>>, %arg6: memref<8x8xf32, #tpu.memory_space<vmem>>) attributes {dimension_semantics = [#tpu.dimension_semantics<parallel>], iteration_bounds = array<i64: 1>, scalar_prefetch = 0 : i64, scratch_operands = 0 : i64, tpu.core_type = #tpu.core_type<tc>, window_params = [{transform_indices = @transform_0, window_bounds = array<i64: 8, 32>}, {pipeline_mode = #tpu.pipeline_mode<synchronous>, transform_indices = @transform_1, window_bounds = array<i64: 32, 128>}, {pipeline_mode = #tpu.pipeline_mode<synchronous>, transform_indices = @transform_2, window_bounds = array<i64: 1, 128>}, {pipeline_mode = #tpu.pipeline_mode<synchronous>, transform_indices = @transform_3, window_bounds = array<i64: 8, 128>}, {pipeline_mode = #tpu.pipeline_mode<synchronous>, transform_indices = @transform_4, window_bounds = array<i64: 8, 1>}, {transform_indices = @transform_5, window_bounds = array<i64: 8, 8>}]} {
    %c0 = arith.constant 0 : index
    %c0_0 = arith.constant 0 : index
    %0 = vector.load %arg1[%c0, %c0_0] : memref<8x32xf32, #tpu.memory_space<vmem>>, vector<8x32xf32>
    %c0_1 = arith.constant 0 : index
    %c0_2 = arith.constant 0 : index
    %1 = vector.load %arg2[%c0_1, %c0_2] : memref<32x128xf32, #tpu.memory_space<vmem>>, vector<32x128xf32>
    %cst = arith.constant dense<0.000000e+00> : vector<8x128xf32>
    %2 = tpu.matmul %0, %1, %cst {dimension_numbers = #tpu.dot_dimension_numbers<[1], [0], [0], [1], [0, 0, 1, 1], [], []>} : vector<8x32xf32>, vector<32x128xf32>, vector<8x128xf32> -> vector<8x128xf32>
    %c0_3 = arith.constant 0 : index
    %c0_4 = arith.constant 0 : index
    %3 = vector.load %arg3[%c0_3, %c0_4] : memref<1x128xf32, #tpu.memory_space<vmem>>, vector<1x128xf32>
    %4 = vector.broadcast %3 : vector<1x128xf32> to vector<8x128xf32>
    %5 = arith.addf %2, %4 : vector<8x128xf32>
    %cst_5 = arith.constant 0.000000e+00 : f32
    %6 = vector.broadcast %cst_5 : f32 to vector<8x128xf32>
    %7 = arith.maximumf %5, %6 : vector<8x128xf32>
    %c0_6 = arith.constant 0 : index
    %c0_7 = arith.constant 0 : index
    %8 = vector.load %arg4[%c0_6, %c0_7] : memref<8x128xf32, #tpu.memory_space<vmem>>, vector<8x128xf32>
    %cst_8 = arith.constant dense<0.000000e+00> : vector<8x8xf32>
    %9 = tpu.matmul %8, %7, %cst_8 {dimension_numbers = #tpu.dot_dimension_numbers<[1], [1], [0], [0], [0, 0, 1, 0], [], []>} : vector<8x128xf32>, vector<8x128xf32>, vector<8x8xf32> -> vector<8x8xf32>
    %c0_9 = arith.constant 0 : index
    %c0_10 = arith.constant 0 : index
    %10 = vector.load %arg5[%c0_9, %c0_10] : memref<8x1xf32, #tpu.memory_space<vmem>>, vector<8x1xf32>
    %11 = vector.broadcast %10 : vector<8x1xf32> to vector<8x8xf32>
    %12 = arith.addf %9, %11 : vector<8x8xf32>
    %c0_11 = arith.constant 0 : index
    %c0_12 = arith.constant 0 : index
    %13 = vector.load %arg6[%c0_11, %c0_12] : memref<8x8xf32, #tpu.memory_space<vmem>>, vector<8x8xf32>
    tpu.vector_store %arg6[%c0_11, %c0_12], %12 {strides = array<i32>} : memref<8x8xf32, #tpu.memory_space<vmem>>, vector<8x8xf32>,
    return
  }
  func.func @transform_0(%arg0: i32) -> (i32, i32) {
    %c0_i32 = arith.constant 0 : i32
    %c0_i32_0 = arith.constant 0 : i32
    return %arg0, %c0_i32 : i32, i32
  }
  func.func @transform_1(%arg0: i32) -> (i32, i32) {
    %c0_i32 = arith.constant 0 : i32
    %c0_i32_0 = arith.constant 0 : i32
    %c0_i32_1 = arith.constant 0 : i32
    return %c0_i32, %c0_i32_0 : i32, i32
  }
  func.func @transform_2(%arg0: i32) -> (i32, i32) {
    %c0_i32 = arith.constant 0 : i32
    %c0_i32_0 = arith.constant 0 : i32
    %c0_i32_1 = arith.constant 0 : i32
    return %c0_i32, %c0_i32_0 : i32, i32
  }
  func.func @transform_3(%arg0: i32) -> (i32, i32) {
    %c0_i32 = arith.constant 0 : i32
    %c0_i32_0 = arith.constant 0 : i32
    %c0_i32_1 = arith.constant 0 : i32
    return %c0_i32, %c0_i32_0 : i32, i32
  }
  func.func @transform_4(%arg0: i32) -> (i32, i32) {
    %c0_i32 = arith.constant 0 : i32
    %c0_i32_0 = arith.constant 0 : i32
    %c0_i32_1 = arith.constant 0 : i32
    return %c0_i32, %c0_i32_0 : i32, i32
  }
  func.func @transform_5(%arg0: i32) -> (i32, i32) {
    %c0_i32 = arith.constant 0 : i32
    %c0_i32_0 = arith.constant 0 : i32
    return %c0_i32, %arg0 : i32, i32
  }
}

</mosaic_0001>

<bundles_post_ra>
// kernel: tpu_custom_call.1
= control target key start
LH: loop header
LB: loop body
LE: loop exit
PB: predicated region body
PF: predicated region fallthrough
CT: control target
= control target key end

     0   :  { %10 = vsyncpa [#allocation3], 0  ;;  %s273_s0 = inlined_call_operand.vmem [shape: f32[8,32], index: 0, kind: input, shape index: {}]   ;;  %s274_s1 = inlined_call_operand.hbm [shape: f32[32,128], index: 1, kind: input, shape index: {}]   ;;  %s275_s2 = inlined_call_operand.vmem [shape: f32[1,128], index: 2, kind: input, shape index: {}]   ;;  %s276_s3 = inlined_call_operand.hbm [shape: f32[8,128], index: 3, kind: input, shape index: {}]   ;;  %s277_s4 = inlined_call_operand.vmem [shape: f32[8,1], index: 4, kind: input, shape index: {}]   ;;  %s278_s5 = inlined_call_operand.hbm [shape: f32[8,8], index: 5, kind: output, shape index: {}]  }
   0x1   :  { %11 = vsyncpa [#allocation6], 0 }
   0x2   :  { %12 = vsyncpa [#allocation4], 0  ;;  %s19_s20 = sshll.u32 %s274_s1, 4  ;;  %s219_s21 = smov [#allocation2]   ;;  %s20_s20 = int_to_ptr.hbm [resolvable:$true] %s19_s20 }
   0x3   :  { %s21_s22 = sshll.u32 %s219_s21, 4  ;;  %s35_s25 = sshll.u32 %s276_s3, 4  ;;  %s22_s22 = int_to_ptr.vmem [resolvable:$true] %s21_s22  ;;  %s36_s25 = int_to_ptr.hbm [resolvable:$true] %s35_s25 }
   0x4   :  { %s220_s26 = smov 128   ;;  %s221_s27 = smov 8  }
   0x5   :  { %27 = dma.hbm_to_vmem [thread:$0]  %s20_s20, 512, %s22_s22, [#allocation3], %s220_s26, %s220_s26, %s221_s27  }
   0x6   :  { %s222_s28 = smov [#allocation5]  }
   0x7   :  { %s37_s29 = sshll.u32 %s222_s28, 4  ;;  %s38_s29 = int_to_ptr.vmem [resolvable:$true] %s37_s29 }
   0x8   :  { %40 = dma.hbm_to_vmem [thread:$0]  %s36_s25, 128, %s38_s29, [#allocation6]  }
   0x9   :  { %213 = dma.done.wait [#allocation3], 512  }
   0xa   :  { %214 = vsyncadd [#allocation3], 4294966784 }
   0xb   :  { %215 = dma.done.wait [#allocation6], 128  }
   0xc   :  { %216 = vsyncadd [#allocation6], 4294967168  ;;  %v55_v0 = vld [vmem:[#allocation2 + $0x18] sm:$0xff]  ;;  %v54_v1 = vld [vmem:[#allocation2 + $0x10] sm:$0xff]  ;;  %vm60_vm0 = vcmask 261120   ;;  %v223_v6 = vmov 0  }
   0xd   :  { %76 = vmatpush.msra.mxu0 %v55_v0  ;;  %v53_v2 = vld [vmem:[#allocation2 + $0x8] sm:$0xff]  ;;  %v52_v3 = vld [vmem:[#allocation2] sm:$0xff]  ;;  %139 = vset.pattern.permute.xlu0 %v223_v6  ;;  %vm112_vm1 = vcmask 64512  }
   0xe   :  { %v51_v4 = vld [vmem:[%s273_s0] sm:$0xff]  ;;  %s224_s0 = smov [#allocation7]  }
   0xf   :  { %77 = vmatpush.msra.mxu0 %v54_v1  ;;  %v86_v5 = vld [vmem:[%s277_s4] sm:$0xff]  ;;  %s119_s9 = sshll.u32 %s224_s0, 4  ;;  %s121_s4 = sshll.u32 %s278_s5, 4  ;;  %s120_s9 = int_to_ptr.vmem [resolvable:$true] %s119_s9  ;;  %s122_s4 = int_to_ptr.hbm [resolvable:$true] %s121_s4 }
  0x10   :  { %89 = vperm.xlu0 %139, %v86_v5   ;;  %v140_v7 = vld [vmem:[%s275_s2] ss:$0 sm:$0xff] }
  0x11   :  { %78 = vmatpush.msra.mxu0 %v53_v2  ;;  %v85_v11 = vld [vmem:[#allocation5] sm:$0xff] }
  0x13   :  { %79 = vmatpush.msra.mxu0 %v52_v3 }
  0x14   :  { %132 = vmatmul.msk.f32.vlgmr.msra.gmra.mxu0 %vm60_vm0, %v51_v4 }
  0x82   :  { %v90_v12 = vpop.permute.xlu0 %89 }
  0x91   :  { %v81_v8 = vpop.f32.mrf.mxu0 }
  0x92   :  { %v82_v9 = vadd.f32 %v140_v7, %v81_v8 }
  0x94   :  { %v84_v10 = vmax.f32 %v82_v9, 0.0 }
  0x96   :  { %107 = vmatpush.xpose.msra.mxu1 %v84_v10 }
  0x99   :  { %108 = vmatmul.f32.vlgmr.msra.gmra.mxu1 %v85_v11 }
 0x116   :  { %v109_v13 = vpop.f32.mrf.mxu1 }
 0x117   :  { %v110_v14 = vadd.f32 %v109_v13, %v90_v12 }
 0x119   :  { %113 = vst.msk [vmem:[#allocation7] sm:$0xff] %vm112_vm1, %v110_v14 }
 0x11a   :  { %124 = dma.vmem_to_hbm [thread:$0]  %s120_s9, 128, %s122_s4, [#allocation4]  }
 0x11b   :  { %217 = dma.done.wait [#allocation4], 128  }
 0x11c   :  { %218 = vsyncadd [#allocation4], 4294967168 }
 0x11d   :  { %129 = vsyncpa [#allocation3], 1 }
 0x11e   :  { %130 = vsyncpa [#allocation6], 1 }
 0x11f   :  { %131 = vsyncpa [#allocation4], 1 }

</bundles_post_ra>
